<compile_context>
chip_gen: v7x
topology: tpu7x:2x2x1
jax: 0.10.0
libtpu: 0.0.40
codegen_flags: <defaults>
</compile_context>

<pallas_src>
import math
from functools import partial

import jax
import jax.numpy as jnp
from jax import lax
from jax.experimental import pallas as pl
from jax.experimental.pallas import tpu as pltpu


def _round_up(x, m):
    return ((x + m - 1) // m) * m


def _vmem_estimate(tq, d, nk_pad, dv_pad, kv_bufs):
    """Per-grid-step VMEM bytes, lane/sublane-padding aware (f32-conservative)."""
    f32 = 4
    tq8 = _round_up(tq, 8)
    q_tile = 2 * f32 * tq8 * _round_up(d, 128)              # q block (tq, D), 2 bufs, lane-padded
    k_block = kv_bufs * f32 * _round_up(d, 8) * nk_pad      # K^T block (D, Nk_pad), lane-dense
    v_block = kv_bufs * f32 * _round_up(nk_pad, 8) * dv_pad
    attn_out = 2 * 2 * f32 * tq8 * nk_pad                   # attn + log_attn blocks, 2 bufs each
    o_out = 2 * f32 * tq8 * dv_pad
    interm = 6 * f32 * tq8 * nk_pad + 2 * f32 * tq8 * dv_pad  # s/z/e/attn/log_attn/mask + o
    return q_tile + k_block + v_block + attn_out + o_out + interm


def _pick_tq(nq, d, nk_pad, dv_pad, budget_bytes, kv_bufs, batch):
    """Largest multiple-of-8 query tile whose padded VMEM estimate fits the budget."""
    nq8 = _round_up(max(nq, 1), 8)
    tq = 8
    for cand in (2048, 1024, 512, 256, 128, 64, 32, 16, 8):
        t = min(cand, nq8)
        if _vmem_estimate(t, d, nk_pad, dv_pad, kv_bufs) <= budget_bytes:
            tq = t
            break
    # v7x has 2 TensorCores: keep >= 2 grid steps for single-batch shapes
    # (negligible cost on single-TC v5e/v6e).
    if batch == 1 and nq > 8:
        tq = min(tq, _round_up(-(-nq // 2), 8))
    return tq


def _sdpa_kernel(q_ref, kt_ref, v_ref, attn_ref, log_attn_ref, out_ref, *,
                 inv_temp, nk_valid, nk_total, use_bf16):
    # q_ref: (1, tq, D), kt_ref: (1, D, Nk_pad), v_ref: (1, Nk_pad, Dv_pad)
    # attn_ref/log_attn_ref: (1, tq, Nk_pad), out_ref: (tq, Dv_pad) block of (Nq_pad, B*Dv_pad)
    qb = q_ref[0].astype(jnp.float32) * inv_temp        # temperature folded into q (tq x D)
    kb = kt_ref[0]                                      # (D, Nk_pad) — pre-transposed, lane-dense
    vb = v_ref[0]                                       # (Nk_pad, Dv_pad)

    if use_bf16:
        qs, ks = qb.astype(jnp.bfloat16), kb.astype(jnp.bfloat16)
    else:
        qs, ks = qb, kb.astype(jnp.float32)

    # scores = (tq, D) @ (D, Nk_pad) on the MXU — no in-kernel transpose of K.
    s = lax.dot_general(qs, ks, dimension_numbers=(((1,), (0,)), ((), ())),
                        preferred_element_type=jnp.float32)          # (tq, Nk_pad)

    if nk_valid < nk_total:
        # Padded key columns must not participate in the softmax.
        col = lax.broadcasted_iota(jnp.int32, s.shape, 1)
        s = jnp.where(col < nk_valid, s, -jnp.inf)

    # Numerically stable softmax / log_softmax along the key axis.
    m = jnp.max(s, axis=-1, keepdims=True)
    z = s - m
    e = jnp.exp(z)
    denom = jnp.sum(e, axis=-1, keepdims=True)
    inv_denom = 1.0 / denom                                           # (tq, 1) exact reciprocal
    attn = e * inv_denom
    log_attn = z - jnp.log(denom)

    attn_ref[0] = attn.astype(attn_ref.dtype)
    log_attn_ref[0] = log_attn.astype(log_attn_ref.dtype)

    if use_bf16:
        o = jnp.dot(attn.astype(jnp.bfloat16), vb.astype(jnp.bfloat16),
                    preferred_element_type=jnp.float32)
    else:
        o = jnp.dot(attn, vb.astype(jnp.float32), preferred_element_type=jnp.float32)

    out_ref[...] = o.astype(out_ref.dtype)     # already in the final (Nq, B*Dv_pad) layout


def _reference(q, k, v, temperature):
    s = jnp.einsum("bnd,bmd->bnm", q, k) / temperature
    attn = jax.nn.softmax(s, axis=-1)
    log_attn = jax.nn.log_softmax(s, axis=-1)
    out = jnp.einsum("bnm,bmd->bnd", attn, v)
    out = jnp.transpose(out, (1, 0, 2)).reshape(v.shape[1], v.shape[2] * v.shape[0])
    return out, attn, log_attn


def scaled_dot_product_attention(q, k, v, temperature, *,
                                 use_bf16_matmul=False,
                                 attn_out_dtype=jnp.float32):
    """q: (B, Nq, D), k: (B, Nk, D), v: (B, Nk, Dv).  Matches the PyTorch module
    (whose final reshape implicitly requires Nq == Nk).

    attn_out_dtype=jnp.bfloat16 halves the dominant HBM write traffic (lossy, opt-in).
    use_bf16_matmul uses bf16 MXU operands with f32 accumulation (lossy, opt-in)."""
    B, Nq, D = q.shape
    _, Nk, Dv = v.shape
    assert k.shape == (B, Nk, D)
    assert Nq == Nk, "the module's output reshape requires Nq == Nk"

    # --- per-generation VMEM sizing (v5e/v6e: 128 MiB physical, v7x: 64 MiB) ---
    try:
        vmem_cap = int(pltpu.get_tpu_info().vmem_capacity_bytes)
    except Exception:
        vmem_cap = 64 * 1024 * 1024                       # conservative (v7x) fallback
    vmem_limit = max(32 * 1024 * 1024, min(int(vmem_cap * 0.75), 100 * 1024 * 1024))
    vmem_budget = int(vmem_limit * 0.75)

    Nk_pad = _round_up(Nk, 128)        # lane-dense attn/log_attn outputs and K^T last dim
    Dv_pad = _round_up(Dv, 128)        # lane-dense direct output (no masked partial stores)

    # TODO(synk): add a column-tiled (chunked two-pass softmax) Pallas path for very large
    # Nk where even single-buffered resident K/V + a tq=8 tile no longer fits VMEM
    # (mainly v7x 64 MiB); fall back to plain XLA there for now.
    if _vmem_estimate(8, D, Nk_pad, Dv_pad, kv_bufs=1) > vmem_budget:
        out, attn, log_attn = _reference(q, k, v, temperature)
        return out, attn.astype(attn_out_dtype), log_attn.astype(attn_out_dtype)

    # Pad the key axis (masked to -inf in-kernel, exact) and Dv (sliced off afterwards);
    # pre-transpose K ONCE in HBM so its VMEM block is lane-dense (D, Nk_pad).
    kp = jnp.pad(k, ((0, 0), (0, Nk_pad - Nk), (0, 0))) if Nk_pad != Nk else k
    vp = v
    if Nk_pad != Nk or Dv_pad != Dv:
        vp = jnp.pad(v, ((0, 0), (0, Nk_pad - Nk), (0, Dv_pad - Dv)))
    kt = jnp.transpose(kp, (0, 2, 1))                     # (B, D, Nk_pad)

    itemsize_attn = jnp.dtype(attn_out_dtype).itemsize

    def _run(single_buffer_kv):
        kv_bufs = 1 if single_buffer_kv else 2
        tq = _pick_tq(Nq, D, Nk_pad, Dv_pad, vmem_budget, kv_bufs, B)
        nq_pad = _round_up(Nq, tq)
        qp = jnp.pad(q, ((0, 0), (0, nq_pad - Nq), (0, 0))) if nq_pad != Nq else q

        # K/V block index never changes across the query-tile axis -> keep them resident;
        # single-buffer them when possible to save VMEM (one extra un-overlapped DMA per
        # batch boundary only).
        if single_buffer_kv:
            kt_spec = pl.BlockSpec((1, D, Nk_pad), lambda b, i: (b, 0, 0),
                                   pipeline_mode=pl.Buffered(1))
            v_spec = pl.BlockSpec((1, Nk_pad, Dv_pad), lambda b, i: (b, 0, 0),
                                  pipeline_mode=pl.Buffered(1))
        else:
            kt_spec = pl.BlockSpec((1, D, Nk_pad), lambda b, i: (b, 0, 0))
            v_spec = pl.BlockSpec((1, Nk_pad, Dv_pad), lambda b, i: (b, 0, 0))

        kernel = partial(
            _sdpa_kernel,
            inv_temp=float(1.0 / temperature),
            nk_valid=Nk,
            nk_total=Nk_pad,
            use_bf16=use_bf16_matmul,
        )

        cost = pl.CostEstimate(
            flops=int(2 * B * Nq * Nk * (D + Dv)),
            transcendentals=int(B * Nq * Nk),
            bytes_accessed=int(4 * (q.size + k.size + v.size)
                               + 2 * B * nq_pad * Nk_pad * itemsize_attn
                               + 4 * nq_pad * B * Dv_pad),
        )

        return pl.pallas_call(
            kernel,
            out_shape=(
                jax.ShapeDtypeStruct((B, nq_pad, Nk_pad), attn_out_dtype),   # attn
                jax.ShapeDtypeStruct((B, nq_pad, Nk_pad), attn_out_dtype),   # log_attn
                jax.ShapeDtypeStruct((nq_pad, B * Dv_pad), jnp.float32),     # bmm(attn, v)
            ),
            grid_spec=pltpu.PrefetchScalarGridSpec(
                num_scalar_prefetch=0,
                grid=(B, nq_pad // tq),
                in_specs=[
                    pl.BlockSpec((1, tq, D), lambda b, i: (b, i, 0)),
                    kt_spec,                                   # K^T resident over i
                    v_spec,                                    # V   resident over i
                ],
                out_specs=[
                    pl.BlockSpec((1, tq, Nk_pad), lambda b, i: (b, i, 0)),
                    pl.BlockSpec((1, tq, Nk_pad), lambda b, i: (b, i, 0)),
                    pl.BlockSpec((tq, Dv_pad), lambda b, i: (i, b)),   # direct (Nq, B*Dv) layout
                ],
            ),
            compiler_params=pltpu.CompilerParams(
                dimension_semantics=("parallel", "parallel"),
                vmem_limit_bytes=vmem_limit,
            ),
            cost_estimate=cost,
        )(qp, kt, vp)

    if hasattr(pl, "Buffered"):
        try:
            attn_p, log_attn_p, out_p = _run(True)
        except Exception:
            # Compiler rejected single-buffered resident K/V -> default double buffering.
            attn_p, log_attn_p, out_p = _run(False)
    else:
        attn_p, log_attn_p, out_p = _run(False)

    # Slice off the Nq/Nk padding.
    attn = attn_p[:, :Nq, :Nk]
    log_attn = log_attn_p[:, :Nq, :Nk]

    output = out_p[:Nq]                                   # (Nq, B*Dv_pad)
    if Dv_pad != Dv:
        output = output.reshape(Nq, B, Dv_pad)[:, :, :Dv].reshape(Nq, B * Dv)
    return output, attn, log_attn


def _check(B, N, D, Dv, atol=1e-5, rtol=1e-5):
    temperature = math.sqrt(D)
    key = jax.random.PRNGKey(0)
    kq, kk, kv = jax.random.split(key, 3)
    q = jax.random.normal(kq, (B, N, D), dtype=jnp.float32)
    k = jax.random.normal(kk, (B, N, D), dtype=jnp.float32)
    v = jax.random.normal(kv, (B, N, Dv), dtype=jnp.float32)

    out, attn, log_attn = scaled_dot_product_attention(q, k, v, temperature)
    jax.block_until_ready((out, attn, log_attn))

    ref_out, ref_attn, ref_log_attn = _reference(q, k, v, temperature)
    assert jnp.allclose(out, ref_out, atol=atol, rtol=rtol)
    assert jnp.allclose(attn, ref_attn, atol=atol, rtol=rtol)
    assert jnp.allclose(log_attn, ref_log_attn, atol=atol, rtol=rtol)


if __name__ == "__main__":
    # Small shape consistent with the module: batch=2, seq=8, hidden=32
    # (Dv < 128 path: in-kernel Dv padding + direct lane-dense output, sliced in wrapper).
    _check(B=2, N=8, D=32, Dv=32)
    # Padded path: Nk 130 -> 256 (masked), Nq 130 -> tile-rounded, Dv=128 direct output.
    _check(B=2, N=130, D=32, Dv=128)
    # Single-batch path: exercises the B==1 tq cap (>= 2 grid steps) and multi-tile grid.
    _check(B=1, N=64, D=32, Dv=32)
    print("KERNEL_OK")
</pallas_src>

<mosaic_0001>
module attributes {stable_mosaic.version = 11 : i64} {
  func.func @_sdpa_kernel(%arg0: i32, %arg1: i32, %arg2: memref<1x8x32xf32, #tpu.memory_space<vmem>>, %arg3: memref<1x32x128xf32, #tpu.memory_space<vmem>>, %arg4: memref<1x128x128xf32, #tpu.memory_space<vmem>>, %arg5: memref<1x8x128xf32, #tpu.memory_space<vmem>>, %arg6: memref<1x8x128xf32, #tpu.memory_space<vmem>>, %arg7: memref<8x128xf32, #tpu.memory_space<vmem>>) attributes {dimension_semantics = [#tpu.dimension_semantics<parallel>, #tpu.dimension_semantics<parallel>], iteration_bounds = array<i64: 2, 1>, scalar_prefetch = 0 : i64, scratch_operands = 0 : i64, tpu.core_type = #tpu.core_type<tc>, window_params = [{transform_indices = @transform_0, window_bounds = array<i64: 1, 8, 32>}, {pipeline_mode = #tpu.pipeline_mode<synchronous>, transform_indices = @transform_1, window_bounds = array<i64: 1, 32, 128>}, {pipeline_mode = #tpu.pipeline_mode<synchronous>, transform_indices = @transform_2, window_bounds = array<i64: 1, 128, 128>}, {transform_indices = @transform_3, window_bounds = array<i64: 1, 8, 128>}, {transform_indices = @transform_4, window_bounds = array<i64: 1, 8, 128>}, {transform_indices = @transform_5, window_bounds = array<i64: 8, 128>}]} {
    %c0 = arith.constant 0 : index
    %c0_0 = arith.constant 0 : index
    %c0_1 = arith.constant 0 : index
    %0 = vector.load %arg2[%c0, %c0_0, %c0_1] : memref<1x8x32xf32, #tpu.memory_space<vmem>>, vector<1x8x32xf32>
    %1 = vector.shape_cast %0 : vector<1x8x32xf32> to vector<8x32xf32>
    %cst = arith.constant 0.176776692 : f32
    %2 = vector.broadcast %cst : f32 to vector<8x32xf32>
    %3 = arith.mulf %1, %2 : vector<8x32xf32>
    %c0_2 = arith.constant 0 : index
    %c0_3 = arith.constant 0 : index
    %c0_4 = arith.constant 0 : index
    %4 = vector.load %arg3[%c0_2, %c0_3, %c0_4] : memref<1x32x128xf32, #tpu.memory_space<vmem>>, vector<1x32x128xf32>
    %5 = vector.shape_cast %4 : vector<1x32x128xf32> to vector<32x128xf32>
    %c0_5 = arith.constant 0 : index
    %c0_6 = arith.constant 0 : index
    %c0_7 = arith.constant 0 : index
    %6 = vector.load %arg4[%c0_5, %c0_6, %c0_7] : memref<1x128x128xf32, #tpu.memory_space<vmem>>, vector<1x128x128xf32>
    %7 = vector.shape_cast %6 : vector<1x128x128xf32> to vector<128x128xf32>
    %cst_8 = arith.constant dense<0.000000e+00> : vector<8x128xf32>
    %8 = tpu.matmul %3, %5, %cst_8 {dimension_numbers = #tpu.dot_dimension_numbers<[1], [0], [0], [1], [0, 0, 1, 1], [], []>} : vector<8x32xf32>, vector<32x128xf32>, vector<8x128xf32> -> vector<8x128xf32>
    %9 = tpu.iota {dimensions = array<i32: 1>} : vector<8x128xi32>
    %c8_i32 = arith.constant 8 : i32
    %10 = vector.broadcast %c8_i32 : i32 to vector<8x128xi32>
    %11 = arith.cmpi slt, %9, %10 : vector<8x128xi32>
    %cst_9 = arith.constant 0xFF800000 : f32
    %12 = vector.broadcast %cst_9 : f32 to vector<8x128xf32>
    %13 = arith.select %11, %8, %12 : vector<8x128xi1>, vector<8x128xf32>
    %cst_10 = arith.constant dense<0xFF800000> : vector<8xf32>
    %14 = vector.multi_reduction <maximumf>, %13, %cst_10 [1] : vector<8x128xf32> to vector<8xf32>
    %15 = vector.shape_cast %14 : vector<8xf32> to vector<8x1xf32>
    %16 = vector.broadcast %15 : vector<8x1xf32> to vector<8x128xf32>
    %17 = arith.subf %13, %16 : vector<8x128xf32>
    %18 = math.exp %17 : vector<8x128xf32>
    %cst_11 = arith.constant dense<0.000000e+00> : vector<8xf32>
    %19 = vector.multi_reduction <add>, %18, %cst_11 [1] : vector<8x128xf32> to vector<8xf32>
    %20 = vector.shape_cast %19 : vector<8xf32> to vector<8x1xf32>
    %cst_12 = arith.constant 1.000000e+00 : f32
    %21 = vector.broadcast %cst_12 : f32 to vector<8x1xf32>
    %22 = arith.divf %21, %20 : vector<8x1xf32>
    %23 = vector.broadcast %22 : vector<8x1xf32> to vector<8x128xf32>
    %24 = arith.mulf %18, %23 : vector<8x128xf32>
    %25 = math.log %20 : vector<8x1xf32>
    %26 = vector.broadcast %25 : vector<8x1xf32> to vector<8x128xf32>
    %27 = arith.subf %17, %26 : vector<8x128xf32>
    %c0_13 = arith.constant 0 : index
    %c0_14 = arith.constant 0 : index
    %c0_15 = arith.constant 0 : index
    %28 = vector.load %arg5[%c0_13, %c0_14, %c0_15] : memref<1x8x128xf32, #tpu.memory_space<vmem>>, vector<1x8x128xf32>
    %29 = vector.shape_cast %28 : vector<1x8x128xf32> to vector<8x128xf32>
    %30 = vector.shape_cast %24 : vector<8x128xf32> to vector<1x8x128xf32>
    tpu.vector_store %arg5[%c0_13, %c0_14, %c0_15], %30 {strides = array<i32>} : memref<1x8x128xf32, #tpu.memory_space<vmem>>, vector<1x8x128xf32>,
    %c0_16 = arith.constant 0 : index
    %c0_17 = arith.constant 0 : index
    %c0_18 = arith.constant 0 : index
    %31 = vector.load %arg6[%c0_16, %c0_17, %c0_18] : memref<1x8x128xf32, #tpu.memory_space<vmem>>, vector<1x8x128xf32>
    %32 = vector.shape_cast %31 : vector<1x8x128xf32> to vector<8x128xf32>
    %33 = vector.shape_cast %27 : vector<8x128xf32> to vector<1x8x128xf32>
    tpu.vector_store %arg6[%c0_16, %c0_17, %c0_18], %33 {strides = array<i32>} : memref<1x8x128xf32, #tpu.memory_space<vmem>>, vector<1x8x128xf32>,
    %cst_19 = arith.constant dense<0.000000e+00> : vector<8x128xf32>
    %34 = tpu.matmul %24, %7, %cst_19 {dimension_numbers = #tpu.dot_dimension_numbers<[1], [0], [0], [1], [0, 0, 1, 1], [], []>} : vector<8x128xf32>, vector<128x128xf32>, vector<8x128xf32> -> vector<8x128xf32>
    %c0_20 = arith.constant 0 : index
    %c0_21 = arith.constant 0 : index
    %35 = vector.load %arg7[%c0_20, %c0_21] : memref<8x128xf32, #tpu.memory_space<vmem>>, vector<8x128xf32>
    tpu.vector_store %arg7[%c0_20, %c0_21], %34 {strides = array<i32>} : memref<8x128xf32, #tpu.memory_space<vmem>>, vector<8x128xf32>,
    return
  }
  func.func @transform_0(%arg0: i32, %arg1: i32) -> (i32, i32, i32) {
    %c0_i32 = arith.constant 0 : i32
    %c0_i32_0 = arith.constant 0 : i32
    return %arg0, %arg1, %c0_i32 : i32, i32, i32
  }
  func.func @transform_1(%arg0: i32, %arg1: i32) -> (i32, i32, i32) {
    %c0_i32 = arith.constant 0 : i32
    %c0_i32_0 = arith.constant 0 : i32
    %c0_i32_1 = arith.constant 0 : i32
    return %arg0, %c0_i32, %c0_i32_0 : i32, i32, i32
  }
  func.func @transform_2(%arg0: i32, %arg1: i32) -> (i32, i32, i32) {
    %c0_i32 = arith.constant 0 : i32
    %c0_i32_0 = arith.constant 0 : i32
    %c0_i32_1 = arith.constant 0 : i32
    return %arg0, %c0_i32, %c0_i32_0 : i32, i32, i32
  }
  func.func @transform_3(%arg0: i32, %arg1: i32) -> (i32, i32, i32) {
    %c0_i32 = arith.constant 0 : i32
    %c0_i32_0 = arith.constant 0 : i32
    return %arg0, %arg1, %c0_i32 : i32, i32, i32
  }
  func.func @transform_4(%arg0: i32, %arg1: i32) -> (i32, i32, i32) {
    %c0_i32 = arith.constant 0 : i32
    %c0_i32_0 = arith.constant 0 : i32
    return %arg0, %arg1, %c0_i32 : i32, i32, i32
  }
  func.func @transform_5(%arg0: i32, %arg1: i32) -> (i32, i32) {
    %c0_i32 = arith.constant 0 : i32
    return %arg1, %arg0 : i32, i32
  }
}

module attributes {stable_mosaic.version = 11 : i64} {
  func.func @_sdpa_kernel(%arg0: i32, %arg1: i32, %arg2: memref<1x8x32xf32, #tpu.memory_space<vmem>>, %arg3: memref<1x32x128xf32, #tpu.memory_space<vmem>>, %arg4: memref<1x128x128xf32, #tpu.memory_space<vmem>>, %arg5: memref<1x8x128xf32, #tpu.memory_space<vmem>>, %arg6: memref<1x8x128xf32, #tpu.memory_space<vmem>>, %arg7: memref<8x128xf32, #tpu.memory_space<vmem>>) attributes {dimension_semantics = [#tpu.dimension_semantics<parallel>, #tpu.dimension_semantics<parallel>], iteration_bounds = array<i64: 2, 1>, scalar_prefetch = 0 : i64, scratch_operands = 0 : i64, tpu.core_type = #tpu.core_type<tc>, window_params = [{transform_indices = @transform_0, window_bounds = array<i64: 1, 8, 32>}, {transform_indices = @transform_1, window_bounds = array<i64: 1, 32, 128>}, {transform_indices = @transform_2, window_bounds = array<i64: 1, 128, 128>}, {transform_indices = @transform_3, window_bounds = array<i64: 1, 8, 128>}, {transform_indices = @transform_4, window_bounds = array<i64: 1, 8, 128>}, {transform_indices = @transform_5, window_bounds = array<i64: 8, 128>}]} {
    %c0 = arith.constant 0 : index
    %c0_0 = arith.constant 0 : index
    %c0_1 = arith.constant 0 : index
    %0 = vector.load %arg2[%c0, %c0_0, %c0_1] : memref<1x8x32xf32, #tpu.memory_space<vmem>>, vector<1x8x32xf32>
    %1 = vector.shape_cast %0 : vector<1x8x32xf32> to vector<8x32xf32>
    %cst = arith.constant 0.176776692 : f32
    %2 = vector.broadcast %cst : f32 to vector<8x32xf32>
    %3 = arith.mulf %1, %2 : vector<8x32xf32>
    %c0_2 = arith.constant 0 : index
    %c0_3 = arith.constant 0 : index
    %c0_4 = arith.constant 0 : index
    %4 = vector.load %arg3[%c0_2, %c0_3, %c0_4] : memref<1x32x128xf32, #tpu.memory_space<vmem>>, vector<1x32x128xf32>
    %5 = vector.shape_cast %4 : vector<1x32x128xf32> to vector<32x128xf32>
    %c0_5 = arith.constant 0 : index
    %c0_6 = arith.constant 0 : index
    %c0_7 = arith.constant 0 : index
    %6 = vector.load %arg4[%c0_5, %c0_6, %c0_7] : memref<1x128x128xf32, #tpu.memory_space<vmem>>, vector<1x128x128xf32>
    %7 = vector.shape_cast %6 : vector<1x128x128xf32> to vector<128x128xf32>
    %cst_8 = arith.constant dense<0.000000e+00> : vector<8x128xf32>
    %8 = tpu.matmul %3, %5, %cst_8 {dimension_numbers = #tpu.dot_dimension_numbers<[1], [0], [0], [1], [0, 0, 1, 1], [], []>} : vector<8x32xf32>, vector<32x128xf32>, vector<8x128xf32> -> vector<8x128xf32>
    %9 = tpu.iota {dimensions = array<i32: 1>} : vector<8x128xi32>
    %c8_i32 = arith.constant 8 : i32
    %10 = vector.broadcast %c8_i32 : i32 to vector<8x128xi32>
    %11 = arith.cmpi slt, %9, %10 : vector<8x128xi32>
    %cst_9 = arith.constant 0xFF800000 : f32
    %12 = vector.broadcast %cst_9 : f32 to vector<8x128xf32>
    %13 = arith.select %11, %8, %12 : vector<8x128xi1>, vector<8x128xf32>
    %cst_10 = arith.constant dense<0xFF800000> : vector<8xf32>
    %14 = vector.multi_reduction <maximumf>, %13, %cst_10 [1] : vector<8x128xf32> to vector<8xf32>
    %15 = vector.shape_cast %14 : vector<8xf32> to vector<8x1xf32>
    %16 = vector.broadcast %15 : vector<8x1xf32> to vector<8x128xf32>
    %17 = arith.subf %13, %16 : vector<8x128xf32>
    %18 = math.exp %17 : vector<8x128xf32>
    %cst_11 = arith.constant dense<0.000000e+00> : vector<8xf32>
    %19 = vector.multi_reduction <add>, %18, %cst_11 [1] : vector<8x128xf32> to vector<8xf32>
    %20 = vector.shape_cast %19 : vector<8xf32> to vector<8x1xf32>
    %cst_12 = arith.constant 1.000000e+00 : f32
    %21 = vector.broadcast %cst_12 : f32 to vector<8x1xf32>
    %22 = arith.divf %21, %20 : vector<8x1xf32>
    %23 = vector.broadcast %22 : vector<8x1xf32> to vector<8x128xf32>
    %24 = arith.mulf %18, %23 : vector<8x128xf32>
    %25 = math.log %20 : vector<8x1xf32>
    %26 = vector.broadcast %25 : vector<8x1xf32> to vector<8x128xf32>
    %27 = arith.subf %17, %26 : vector<8x128xf32>
    %c0_13 = arith.constant 0 : index
    %c0_14 = arith.constant 0 : index
    %c0_15 = arith.constant 0 : index
    %28 = vector.load %arg5[%c0_13, %c0_14, %c0_15] : memref<1x8x128xf32, #tpu.memory_space<vmem>>, vector<1x8x128xf32>
    %29 = vector.shape_cast %28 : vector<1x8x128xf32> to vector<8x128xf32>
    %30 = vector.shape_cast %24 : vector<8x128xf32> to vector<1x8x128xf32>
    tpu.vector_store %arg5[%c0_13, %c0_14, %c0_15], %30 {strides = array<i32>} : memref<1x8x128xf32, #tpu.memory_space<vmem>>, vector<1x8x128xf32>,
    %c0_16 = arith.constant 0 : index
    %c0_17 = arith.constant 0 : index
    %c0_18 = arith.constant 0 : index
    %31 = vector.load %arg6[%c0_16, %c0_17, %c0_18] : memref<1x8x128xf32, #tpu.memory_space<vmem>>, vector<1x8x128xf32>
    %32 = vector.shape_cast %31 : vector<1x8x128xf32> to vector<8x128xf32>
    %33 = vector.shape_cast %27 : vector<8x128xf32> to vector<1x8x128xf32>
    tpu.vector_store %arg6[%c0_16, %c0_17, %c0_18], %33 {strides = array<i32>} : memref<1x8x128xf32, #tpu.memory_space<vmem>>, vector<1x8x128xf32>,
    %cst_19 = arith.constant dense<0.000000e+00> : vector<8x128xf32>
    %34 = tpu.matmul %24, %7, %cst_19 {dimension_numbers = #tpu.dot_dimension_numbers<[1], [0], [0], [1], [0, 0, 1, 1], [], []>} : vector<8x128xf32>, vector<128x128xf32>, vector<8x128xf32> -> vector<8x128xf32>
    %c0_20 = arith.constant 0 : index
    %c0_21 = arith.constant 0 : index
    %35 = vector.load %arg7[%c0_20, %c0_21] : memref<8x128xf32, #tpu.memory_space<vmem>>, vector<8x128xf32>
    tpu.vector_store %arg7[%c0_20, %c0_21], %34 {strides = array<i32>} : memref<8x128xf32, #tpu.memory_space<vmem>>, vector<8x128xf32>,
    return
  }
  func.func @transform_0(%arg0: i32, %arg1: i32) -> (i32, i32, i32) {
    %c0_i32 = arith.constant 0 : i32
    %c0_i32_0 = arith.constant 0 : i32
    return %arg0, %arg1, %c0_i32 : i32, i32, i32
  }
  func.func @transform_1(%arg0: i32, %arg1: i32) -> (i32, i32, i32) {
    %c0_i32 = arith.constant 0 : i32
    %c0_i32_0 = arith.constant 0 : i32
    %c0_i32_1 = arith.constant 0 : i32
    return %arg0, %c0_i32, %c0_i32_0 : i32, i32, i32
  }
  func.func @transform_2(%arg0: i32, %arg1: i32) -> (i32, i32, i32) {
    %c0_i32 = arith.constant 0 : i32
    %c0_i32_0 = arith.constant 0 : i32
    %c0_i32_1 = arith.constant 0 : i32
    return %arg0, %c0_i32, %c0_i32_0 : i32, i32, i32
  }
  func.func @transform_3(%arg0: i32, %arg1: i32) -> (i32, i32, i32) {
    %c0_i32 = arith.constant 0 : i32
    %c0_i32_0 = arith.constant 0 : i32
    return %arg0, %arg1, %c0_i32 : i32, i32, i32
  }
  func.func @transform_4(%arg0: i32, %arg1: i32) -> (i32, i32, i32) {
    %c0_i32 = arith.constant 0 : i32
    %c0_i32_0 = arith.constant 0 : i32
    return %arg0, %arg1, %c0_i32 : i32, i32, i32
  }
  func.func @transform_5(%arg0: i32, %arg1: i32) -> (i32, i32) {
    %c0_i32 = arith.constant 0 : i32
    return %arg1, %arg0 : i32, i32
  }
}

</mosaic_0001>

<bundles_post_ra>
// kernel: tpu_custom_call.1
= control target key start
LH: loop header
LB: loop body
LE: loop exit
PB: predicated region body
PF: predicated region fallthrough
CT: control target
= control target key end

     0   :  { %11 = vsyncpa [#allocation3], 0  ;;  %s1569_s0 = inlined_call_operand.hbm [shape: f32[2,8,32], index: 0, kind: input, shape index: {}]   ;;  %s1570_s1 = inlined_call_operand.hbm [shape: f32[2,32,128], index: 1, kind: input, shape index: {}]   ;;  %s1571_s2 = inlined_call_operand.hbm [shape: f32[2,128,128], index: 2, kind: input, shape index: {}]   ;;  %s1572_s3 = inlined_call_operand.hbm [shape: f32[2,8,128], index: 3, kind: output, shape index: {0}]   ;;  %s1573_s4 = inlined_call_operand.hbm [shape: f32[2,8,128], index: 4, kind: output, shape index: {1}]   ;;  %s1574_s5 = inlined_call_operand.hbm [shape: f32[8,256], index: 5, kind: output, shape index: {2}]  }
   0x1   :  { %13 = vsyncpa [#allocation3 + $0x1], 0 }
   0x2   :  { %14 = vsyncpa [#allocation6], 0 }
   0x3   :  { %15 = vsyncpa [#allocation4], 0 }
   0x4   :  { %17 = vsyncpa [#allocation4 + $0x1], 0 }
   0x5   :  { %18 = vsyncpa [#allocation10], 0 }
   0x6   :  { %20 = vsyncpa [#allocation10 + $0x1], 0  ;;  %s1230_s18 = smov 0   ;;  %s1232_s19 = smov 0  }
   0x7   :  { %s1234_s20 = smov 0   ;;  %s1236_s21 = smov 0  }
   0x8   :  { %s1238_s22 = smov 0   ;;  %s1240_s23 = smov 0  }
   0x9 LB: > { %s1261_s24 = sadd.s32 4294967295, %s1187_s23   ;;  %s1578_s25 = sadd.s32 4294967294, %s1187_s23   ;;  %s1187_s23 = sphi %s1240_s23, %s26_s23   ;;  %s1183_s22 = sphi %s1238_s22, %s1595_s22   ;;  %s1179_s21 = sphi %s1236_s21, %s1594_s21   ;;  %s1175_s20 = sphi %s1234_s20, %s1593_s20   ;;  %s1171_s19 = sphi %s1232_s19, %s1592_s19   ;;  %s1167_s18 = sphi %s1230_s18, %s1591_s18  }
   0xa   : > { %p60_p0 = scmp.ne.s32.totalorder %s1171_s19, %s1167_s18  ;;  %p61_p1 = scmp.eq.s32.totalorder %s1261_s24, 0 }
   0xb   : > { %p144_p2 = scmp.eq.s32.totalorder %s1578_s25, 1  ;;  %p733_p3 = scmp.ge.s32.totalorder %s1187_s23, 1 }
   0xc   : > { %p1270_p4 = por %p61_p1, %p60_p0  ;;  %p207_p5 = scmp.lt.s32.totalorder %s1187_s23, 3 }
   0xd   : > { %p1275_p6 = por %p144_p2, %p60_p0  ;;  %s755_s28 = sshll.u32 %s1179_s21, 9 }
   0xe   : > { %s1579_s26 = scalar_select %p1270_p4, 1, 0 }
   0xf   : > { %s1580_s27 = scalar_select %p1275_p6, 1, 0 }
  0x10   : > { %p1280_p7 = pnand %p733_p3, %p207_p5  ;;  %s1287_s7 = scalar_lea.hbm %s1570_s1, %s755_s28 }
  0x11   : > { %s1189_s8 = smov [#allocation5]   ;;  %s756_s11 = sshll.u32 %s1179_s21, 11 }
  0x12   : > { %s1581_s29 = scalar_select %p1280_p7, 1, 0 }
  0x13   : > { %p867_p8 = pneg %p1280_p7  ;;  %s222_s9 = sshll.u32 %s1189_s8, 4  ;;  %s1291_s9 = int_to_ptr.vmem [resolvable:$true] %s222_s9 }
  0x14   : > { %s1303_s14 = scalar_lea.hbm %s1571_s2, %s756_s11  ;;  %s951_s15 = scalar_lea.hbm %s1287_s7, 512 }
  0x15   : > { %p1295_p9 = pnand %p867_p8, %p1270_p4  ;;  %p952_p11 = scmp.ne.s32.totalorder %s1287_s7, %s951_s15 }
  0x16   : > { %s956_s28 = scalar_lea.hbm %s1570_s1, 1024  ;;  %p957_p1 = scmp.lt.u32.totalorder %s1287_s7, %s1570_s1 }
  0x17   : > { %p953_p12 = pneg %p1295_p9  ;;  %p958_p2 = scmp.lt.u32.totalorder %s956_s28, %s951_s15 }
  0x18   : > { %p960_p5 = scmp.lt.u32.totalorder %s951_s15, %s1287_s7 }
  0x19   : > { %p954_p13 = pnand %p953_p12, %p952_p11  ;;  %p959_p3 = por %p958_p2, %p957_p1 }
  0x1b   : > { %p955_p0 = pneg %p954_p13  ;;  %p961_p8 = por %p960_p5, %p959_p3 }
  0x1d   : > { %p962_p10 = pnand %p961_p8, %p955_p0 }
  0x1f   : > { %965 = shalt.err (!%p962_p10)
}
  0x20   : > { %s966_s8 = scalar_lea.vmem %s1291_s9, 512  ;;  %p974_p4 = scmp.lt.s32.totalorder %s1291_s9, %s1291_s9 }
  0x21   : > { %p967_p11 = scmp.ne.s32.totalorder %s1291_s9, %s966_s8  ;;  %p975_p7 = scmp.lt.s32.totalorder %s966_s8, %s966_s8 }
  0x23   : > { %p969_p13 = pnand %p967_p11, %p953_p12  ;;  %p976_p1 = por %p975_p7, %p974_p4 }
  0x25   : > { %p970_p6 = pneg %p969_p13 }
  0x27   : > { %p977_p2 = pnand %p976_p1, %p970_p6 }
  0x29   : > { %980 = shalt.err (!%p977_p2)
}
  0x2a   : > { %s1190_s11 = smov 128   ;;  %s1191_s12 = smov 8  }
  0x2b   : > { %870 = dma.hbm_to_vmem [thread:$0]  (!%p1295_p9), %s1287_s7, 512, %s1291_s9, [#allocation6], %s1190_s11, %s1190_s11, %s1191_s12  }
  0x2c   : > { %s1192_s13 = smov [#allocation7]   ;;  %s981_s16 = scalar_lea.hbm %s1303_s14, 2048 }
  0x2d   : > { %s238_s15 = sshll.u32 %s1192_s13, 4  ;;  %p982_p4 = scmp.ne.s32.totalorder %s1303_s14, %s981_s16  ;;  %s239_s15 = int_to_ptr.vmem [resolvable:$true] %s238_s15 }
  0x2e   : > { %s986_s30 = scalar_lea.hbm %s1571_s2, 4096  ;;  %p987_p10 = scmp.lt.u32.totalorder %s1303_s14, %s1571_s2 }
  0x2f   : > { %p984_p6 = pnand %p982_p4, %p953_p12  ;;  %p988_p0 = scmp.lt.u32.totalorder %s986_s30, %s981_s16 }
  0x30   : > { %p990_p5 = scmp.lt.u32.totalorder %s981_s16, %s1303_s14 }
  0x31   : > { %p985_p7 = pneg %p984_p6  ;;  %p989_p3 = por %p988_p0, %p987_p10 }
  0x33   : > { %p991_p8 = por %p990_p5, %p989_p3 }
  0x35   : > { %p992_p11 = pnand %p991_p8, %p985_p7 }
  0x37   : > { %995 = shalt.err (!%p992_p11)
}
  0x38   : > { %s996_s7 = scalar_lea.vmem %s239_s15, 2048  ;;  %p1004_p4 = scmp.lt.s32.totalorder %s239_s15, %s239_s15 }
  0x39   : > { %p997_p13 = scmp.ne.s32.totalorder %s239_s15, %s996_s7  ;;  %p1005_p6 = scmp.lt.s32.totalorder %s996_s7, %s996_s7 }
  0x3b   : > { %p999_p1 = pnand %p997_p13, %p953_p12  ;;  %p1006_p0 = por %p1005_p6, %p1004_p4 }
  0x3d   : > { %p1000_p2 = pneg %p999_p1 }
  0x3f   : > { %p1007_p10 = pnand %p1006_p0, %p1000_p2 }
  0x41   : > { %1010 = shalt.err (!%p1007_p10)
}
  0x42   : > { %873 = dma.hbm_to_vmem [thread:$0]  (!%p1295_p9), %s1303_s14, 2048, %s239_s15, [#allocation6], %s1190_s11, %s1190_s11, %s1191_s12  }
  0x43   : > { %s38_s9 = sadd.s32 1, %s1183_s22  ;;  %s47_s13 = sadd.s32 1, %s1175_s20 }
  0x44   : > { %p40_p12 = scmp.ge.s32.totalorder %s38_s9, 2  ;;  %p54_p7 = scmp.ne.s32.totalorder %s1175_s20, %s1171_s19 }
  0x45   : > { %p55_p3 = scmp.eq.s32.totalorder %s1187_s23, 0  ;;  %p138_p5 = scmp.eq.s32.totalorder %s1261_s24, 1 }
  0x46   : > { %s1597_s9 = smov (%p40_p12, %s38_s9), 0  ;;  %p888_p9 = scmp.lt.s32.totalorder %s1187_s23, 2 }
  0x47   : > { %p1365_p8 = por %p55_p3, %p54_p7  ;;  %p1369_p11 = por %p138_p5, %p54_p7 }
  0x48   : > { %s42_s14 = ssub.s32 %s1183_s22, %s1597_s9  ;;  %s252_s11 = sand.u32 1, %s1175_s20  }
  0x49   : > { %p45_p13 = scmp.eq.s32.totalorder %s42_s14, 0  ;;  %s739_s12 = sshll.u32 %s252_s11, 3 }
  0x4a   : > { %s740_s17 = sshll.u32 %s1183_s22, 7  ;;  %s256_s8 = scalar_lea.vmem [#allocation2], %s739_s12 }
  0x4b   : > { %s1378_s15 = scalar_select %p45_p13, %s1175_s20, %s47_s13  }
  0x4c   : > { %s1384_s6 = scalar_lea.hbm %s1569_s0, %s740_s17  ;;  %s264_s7 = sshll.u32 %s256_s8, 4  ;;  %s1386_s7 = int_to_ptr.vmem [resolvable:$true] %s264_s7 }
  0x4d   : > { %p1390_p1 = pnand %p888_p9, %p1365_p8  ;;  %s253_s13 = scalar_lea.sflag [#allocation3], %s252_s11 }
  0x4e   : > { %s1011_s25 = scalar_lea.hbm %s1384_s6, 128  ;;  %s1016_s28 = scalar_lea.hbm %s1569_s0, 256 }
  0x4f   : > { %p1012_p2 = scmp.ne.s32.totalorder %s1384_s6, %s1011_s25  ;;  %p1013_p4 = pneg %p1390_p1 }
  0x50   : > { %p1017_p10 = scmp.lt.u32.totalorder %s1384_s6, %s1569_s0  ;;  %p1018_p12 = scmp.lt.u32.totalorder %s1016_s28, %s1011_s25 }
  0x51   : > { %p1014_p6 = pnand %p1013_p4, %p1012_p2  ;;  %p1020_p3 = scmp.lt.u32.totalorder %s1011_s25, %s1384_s6 }
  0x52   : > { %p1019_p7 = por %p1018_p12, %p1017_p10 }
  0x53   : > { %p1015_p0 = pneg %p1014_p6 }
  0x54   : > { %p1021_p5 = por %p1020_p3, %p1019_p7 }
  0x56   : > { %p1022_p8 = pnand %p1021_p5, %p1015_p0 }
  0x58   : > { %1025 = shalt.err (!%p1022_p8)
}
  0x59   : > { %s1026_s11 = scalar_lea.vmem %s1386_s7, 128  ;;  %s1193_s8 = smov [#allocation2]  }
  0x5a   : > { %p1027_p9 = scmp.ne.s32.totalorder %s1386_s7, %s1026_s11  ;;  %s1031_s12 = sshll.u32 %s1193_s8, 4  ;;  %s1032_s12 = int_to_ptr.vmem [resolvable:$false] %s1031_s12 }
  0x5b   : > { %s1033_s17 = scalar_lea.vmem %s1032_s12, 256  ;;  %p1034_p6 = scmp.lt.s32.totalorder %s1386_s7, %s1032_s12 }
  0x5c   : > { %p1029_p13 = pnand %p1027_p9, %p1013_p4  ;;  %p1035_p10 = scmp.lt.s32.totalorder %s1033_s17, %s1026_s11 }
  0x5e   : > { %p1030_p2 = pneg %p1029_p13  ;;  %p1036_p12 = por %p1035_p10, %p1034_p6 }
  0x60   : > { %p1037_p7 = pnand %p1036_p12, %p1030_p2 }
  0x62   : > { %1040 = shalt.err (!%p1037_p7)
}
  0x63   : > { %877 = dma.hbm_to_vmem [thread:$0]  (!%p1390_p1), %s1384_s6, 128, %s1386_s7, %s253_s13  }
  0x64   : > { %p1586_p0 = scmp.ne.s32.totalorder %s1581_s29, 0 }
  0x65   : > { %s1422_s25 = sand.u32 (!%p1586_p0), 1, %s1171_s19   ;;  %p1587_p4 = scmp.ne.s32.totalorder (!%p1586_p0), %s1579_s26, 0 }
  0x66   : > { %273 = sbr.rel (%p1586_p0) target bundleno = 874 (0x36a), region = 32  ;;  %s1425_s28 = sshll.u32 (!%p1586_p0), %s1422_s25, 3 }
  0x67   : > { %s276_s10 = scalar_lea.sflag (!%p1586_p0), [#allocation3], %s1422_s25  ;;  %s279_s30 = scalar_lea.vmem (!%p1586_p0), [#allocation2], %s1425_s28 }
  0x6d   : > { %1150 = dma.done.wait (%p1587_p4), %s276_s10, 128  }
  0x6e   : > { %1152 = vsyncadd (%p1587_p4), %s276_s10, 4294967168 }
  0x6f   : > { %1154 = dma.done.wait (%p1587_p4), [#allocation6], 2560  }
  0x70   : > { %1156 = vsyncadd (%p1587_p4), [#allocation6], 4294964736  ;;  %v1194_v0 = vmov 0.0|0.0   ;;  %vm1195_vm0 = vmmov 0   ;;  %v1196_v1 = vmov 0.0   ;;  %v326_v2 = vld [vmem:[#allocation5] sm:$0xff]  ;;  %v420_v10 = vlaneseq }
  0x71   : > { %825 = vmatprep.subr.bf16.mxu0 %v1194_v0  ;;  %787 = vmatprep.mubr.msk.f32.mxu0 %vm1195_vm0, %v1196_v1  ;;  %v327_v3 = vld [vmem:[#allocation5 + $0x8] sm:$0xff]  ;;  %v328_v4 = vld [vmem:[#allocation5 + $0x10] sm:$0xff]  ;;  %v329_v6 = vld [vmem:[#allocation5 + $0x18] sm:$0xff]  ;;  %vm346_vm1 = vcmask 261120   ;;  %s309_s26 = scalar_lea.vmem [#allocation8], %s1425_s28  ;;  %s316_s29 = scalar_lea.vmem [#allocation9], %s1425_s28 }
  0x72   : > { %831 = vmatprep.subr.bf16.mxu1 %v1194_v0  ;;  %822 = vmatprep.mubr.msk.f32.mxu1 %vm1195_vm0, %v1196_v1  ;;  %v826_v5 = vpack.c.bf16 %v327_v3, %v326_v2  ;;  %v829_v7 = vpack.c.bf16 %v329_v6, %v328_v4  ;;  %v324_v8 = vld [vmem:[%s279_s30] sm:$0xff]  ;;  %v421_v11 = vand.u32 127, %v420_v10  ;;  %v330_v15 = vld [vmem:[#allocation7] sm:$0xff]  ;;  %v331_v16 = vld [vmem:[#allocation7 + $0x8] sm:$0xff]  ;;  %s515_s6 = sand.u32 1, %s1261_s24   ;;  %s1453_s7 = sshll.u32 %s1179_s21, 7 }
  0x73   : > { %v325_v9 = vmul.f32 0.17677669, %v324_v8  ;;  %v332_v17 = vld [vmem:[#allocation7 + $0x10] sm:$0xff]  ;;  %v832_v18 = vpack.c.bf16 %v331_v16, %v330_v15  ;;  %v333_v19 = vld [vmem:[#allocation7 + $0x18] sm:$0xff]  ;;  %v334_v21 = vld [vmem:[#allocation7 + $0x20] sm:$0xff]  ;;  %s1459_s11 = scalar_lea.hbm %s1573_s4, %s1453_s7  ;;  %s549_s8 = sshll.u32 %s316_s29, 4  ;;  %s1461_s8 = int_to_ptr.vmem [resolvable:$true] %s549_s8 }
  0x74   : > { %827 = vmatpush3.bf16.msra.mxu0 %v826_v5  ;;  %vm422_vm2 = vcmp.lt.s32.totalorder %v421_v11, 8  ;;  %v835_v20 = vpack.c.bf16 %v333_v19, %v332_v17  ;;  %v335_v22 = vld [vmem:[#allocation7 + $0x28] sm:$0xff]  ;;  %v336_v24 = vld [vmem:[#allocation7 + $0x30] sm:$0xff]  ;;  %v337_v25 = vld [vmem:[#allocation7 + $0x38] sm:$0xff]  ;;  %s1467_s10 = scalar_lea.hbm %s1572_s3, %s1453_s7  ;;  %s1469_s21 = scalar_lea.sflag [#allocation10], %s515_s6 }
  0x75   : > { %828 = vmatprep.subr.bf16.mxu0 %v1194_v0  ;;  %833 = vmatpush3.bf16.msra.mxu1 %v832_v18  ;;  %v838_v23 = vpack.c.bf16 %v335_v22, %v334_v21  ;;  %v841_v26 = vpack.c.bf16 %v337_v25, %v336_v24  ;;  %v338_v27 = vld [vmem:[#allocation7 + $0x40] sm:$0xff]  ;;  %v339_v28 = vld [vmem:[#allocation7 + $0x48] sm:$0xff]  ;;  %v340_v34 = vld [vmem:[#allocation7 + $0x50] sm:$0xff]  ;;  %s1041_s24 = scalar_lea.vmem %s1461_s8, 128  ;;  %s1197_s30 = smov [#allocation9]  }
  0x76   : > { %834 = vmatprep.subr.bf16.mxu1 %v1194_v0  ;;  %v844_v29 = vpack.c.bf16 %v339_v28, %v338_v27  ;;  %v341_v35 = vld [vmem:[#allocation7 + $0x58] sm:$0xff]  ;;  %v342_v37 = vld [vmem:[#allocation7 + $0x60] sm:$0xff]  ;;  %v343_v38 = vld [vmem:[#allocation7 + $0x68] sm:$0xff]  ;;  %p1042_p1 = scmp.ne.s32.totalorder %s1461_s8, %s1041_s24  ;;  %s1045_s14 = sshll.u32 %s1197_s30, 4  ;;  %s1046_s14 = int_to_ptr.vmem [resolvable:$false] %s1045_s14 }
  0x77   : > { %v847_v36 = vpack.c.bf16 %v341_v35, %v340_v34  ;;  %v850_v39 = vpack.c.bf16 %v343_v38, %v342_v37  ;;  %v344_v40 = vld [vmem:[#allocation7 + $0x70] sm:$0xff]  ;;  %v345_v41 = vld [vmem:[#allocation7 + $0x78] sm:$0xff]  ;;  %p1048_p8 = scmp.lt.s32.totalorder %s1461_s8, %s1046_s14 }
  0x78   : > { %830 = vmatpush3.bf16.msra.mxu0 %v829_v7  ;;  %v853_v42 = vpack.c.bf16 %v345_v41, %v344_v40  ;;  %p1043_p3 = pnand %p1042_p1, %p1369_p11 }
  0x79   : > { %836 = vmatpush3.bf16.msra.mxu1 %v835_v20 }
  0x7a   : > { %837 = vmatprep.subr.bf16.mxu1 %v1194_v0  ;;  %p1044_p5 = pneg %p1043_p3 }
  0x7b   : > { %788 = vmatmul.mubr.msk.f32.vlgmr.msra.gmra.mrb[0].mxu0 %vm346_vm1, %v325_v9 }
  0x7d   : > { %839 = vmatpush3.bf16.msra.mxu1 %v838_v23 }
  0x7e   : > { %840 = vmatprep.subr.bf16.mxu1 %v1194_v0 }
  0x81   : > { %842 = vmatpush3.bf16.msra.mxu1 %v841_v26 }
  0x82   : > { %843 = vmatprep.subr.bf16.mxu1 %v1194_v0 }
  0x85   : > { %845 = vmatpush3.bf16.msra.mxu1 %v844_v29 }
  0x86   : > { %846 = vmatprep.subr.bf16.mxu1 %v1194_v0 }
  0x89   : > { %848 = vmatpush3.bf16.msra.mxu1 %v847_v36 }
  0x8a   : > { %849 = vmatprep.subr.bf16.mxu1 %v1194_v0 }
  0x8d   : > { %851 = vmatpush3.bf16.msra.mxu1 %v850_v39 }
  0x8e   : > { %852 = vmatprep.subr.bf16.mxu1 %v1194_v0 }
  0x91   : > { %854 = vmatpush3.bf16.msra.mxu1 %v853_v42 }
 0x14e   : > { %v416_v12 = vpop.f32.mrb[0].mxu0 }
 0x14f   : > { %v789_v13 = vpop.f32.mrb[1].mxu0  ;;  %v423_v14 = vsel %vm422_vm2, %v416_v12, -inf }
 0x150   : > { %424 = vmax.xlane.f32.xlu0 %v423_v14 }
 0x1dd   : > { %v425_v30 = vpop.xlane.xlu0 %424 }
 0x1de   : > { %v426_v31 = vsub.f32 %v423_v14, %v425_v30 }
 0x1e0   : > { %v427_v32 = vmul.f32 1.442695, %v426_v31 }
 0x1e2   : > { %945 = vpow2.f32 %v427_v32 }
 0x1ec   : > { %v946_v33 = vpop.eup %945 }
 0x1ed   : > { %429 = vadd.xlane.f32.xlu0 %v946_v33 }
 0x27a   : > { %v430_v43 = vpop.xlane.xlu0 %429 }
 0x27b   : > { %947 = vrcp.f32 %v430_v43 }
 0x27c   : > { %949 = vlog2.f32 %v430_v43 }
 0x285   : > { %v948_v44 = vpop.eup %947 }
 0x286   : > { %v950_v45 = vpop.eup %949  ;;  %v433_v46 = vmul.f32 %v948_v44, %v946_v33 }
 0x287   : > { %v435_v47 = vmul.f32 0.6931472, %v950_v45 }
 0x288   : > { %823 = vmatmul.mubr.f32.vlgmr.msra.gmra.mrb[0].mxu1 %v433_v46  ;;  %437 = vst [vmem:[%s309_s26] sm:$0xff] %v433_v46 }
 0x289   : > { %v436_v48 = vsub.f32 %v426_v31, %v435_v47 }
 0x28b   : > { %438 = vst [vmem:[%s316_s29] sm:$0xff] %v436_v48  ;;  %s1047_s29 = scalar_lea.vmem %s1046_s14, 256 }
 0x28c   : > { %p1049_p9 = scmp.lt.s32.totalorder %s1047_s29, %s1041_s24 }
 0x28e   : > { %p1050_p13 = por %p1049_p9, %p1048_p8 }
 0x290   : > { %p1051_p2 = pnand %p1050_p13, %p1044_p5 }
 0x292   : > { %1054 = shalt.err (!%p1051_p2)
}
 0x293   : > { %s1055_s6 = scalar_lea.hbm %s1459_s11, 128  ;;  %s1059_s17 = scalar_lea.hbm %s1573_s4, 256 }
 0x294   : > { %p1056_p6 = scmp.ne.s32.totalorder %s1459_s11, %s1055_s6  ;;  %p1060_p7 = scmp.lt.u32.totalorder %s1459_s11, %s1573_s4 }
 0x295   : > { %p1061_p0 = scmp.lt.u32.totalorder %s1059_s17, %s1055_s6  ;;  %p1063_p1 = scmp.lt.u32.totalorder %s1055_s6, %s1459_s11 }
 0x296   : > { %p1057_p10 = pnand %p1056_p6, %p1369_p11 }
 0x297   : > { %p1062_p4 = por %p1061_p0, %p1060_p7 }
 0x298   : > { %p1058_p12 = pneg %p1057_p10 }
 0x299   : > { %p1064_p3 = por %p1063_p1, %p1062_p4 }
 0x29b   : > { %p1065_p5 = pnand %p1064_p3, %p1058_p12 }
 0x29d   : > { %1068 = shalt.err (!%p1065_p5)
}
 0x29e   : > { %862 = dma.vmem_to_hbm [thread:$0]  (%p1369_p11), %s1461_s8, 128, %s1459_s11, %s1469_s21  }
 0x29f   : > { %s535_s24 = sshll.u32 %s309_s26, 4  ;;  %s511_s29 = scalar_lea.sflag [#allocation4], %s1422_s25  ;;  %s536_s24 = int_to_ptr.vmem [resolvable:$true] %s535_s24 }
 0x2a0   : > { %s1069_s13 = scalar_lea.vmem %s536_s24, 128  ;;  %s1198_s6 = smov [#allocation8]  }
 0x2a1   : > { %p1070_p8 = scmp.ne.s32.totalorder %s536_s24, %s1069_s13  ;;  %s1073_s12 = sshll.u32 %s1198_s6, 4  ;;  %s1074_s12 = int_to_ptr.vmem [resolvable:$false] %s1073_s12 }
 0x2a2   : > { %s1075_s17 = scalar_lea.vmem %s1074_s12, 256  ;;  %p1076_p2 = scmp.lt.s32.totalorder %s536_s24, %s1074_s12 }
 0x2a3   : > { %p1071_p9 = pnand %p1070_p8, %p1369_p11  ;;  %p1077_p6 = scmp.lt.s32.totalorder %s1075_s17, %s1069_s13 }
 0x2a5   : > { %p1072_p13 = pneg %p1071_p9  ;;  %p1078_p10 = por %p1077_p6, %p1076_p2 }
 0x2a7   : > { %p1079_p12 = pnand %p1078_p10, %p1072_p13 }
 0x2a9   : > { %1082 = shalt.err (!%p1079_p12)
}
 0x2aa   : > { %s1083_s25 = scalar_lea.hbm %s1467_s10, 128  ;;  %s1087_s8 = scalar_lea.hbm %s1572_s3, 256 }
 0x2ab   : > { %p1084_p7 = scmp.ne.s32.totalorder %s1467_s10, %s1083_s25  ;;  %p1088_p1 = scmp.lt.u32.totalorder %s1467_s10, %s1572_s3 }
 0x2ac   : > { %p1089_p3 = scmp.lt.u32.totalorder %s1087_s8, %s1083_s25  ;;  %p1091_p8 = scmp.lt.u32.totalorder %s1083_s25, %s1467_s10 }
 0x2ad   : > { %p1085_p0 = pnand %p1084_p7, %p1369_p11 }
 0x2ae   : > { %p1090_p5 = por %p1089_p3, %p1088_p1 }
 0x2af   : > { %p1086_p4 = pneg %p1085_p0 }
 0x2b0   : > { %p1092_p9 = por %p1091_p8, %p1090_p5 }
 0x2b2   : > { %p1093_p13 = pnand %p1092_p9, %p1086_p4 }
 0x2b4   : > { %1096 = shalt.err (!%p1093_p13)
}
 0x2b5   : > { %861 = dma.vmem_to_hbm [thread:$0]  (%p1369_p11), %s536_s24, 128, %s1467_s10, %s511_s29  }
 0x2b6   : > { %s323_s13 = scalar_lea.vmem [#allocation11], %s1425_s28  ;;  %s1520_s25 = scalar_lea.hbm %s1574_s5, %s1453_s7 }
 0x2b7   : > { %s564_s6 = sshll.u32 %s323_s13, 4  ;;  %s1199_s28 = smov [#allocation11]   ;;  %s1514_s6 = int_to_ptr.vmem [resolvable:$true] %s564_s6 }
 0x2b8   : > { %s1097_s26 = scalar_lea.vmem %s1514_s6, 128  ;;  %s1101_s10 = sshll.u32 %s1199_s28, 4  ;;  %s1102_s10 = int_to_ptr.vmem [resolvable:$false] %s1101_s10 }
 0x2b9   : > { %p1098_p2 = scmp.ne.s32.totalorder %s1514_s6, %s1097_s26  ;;  %s1103_s24 = scalar_lea.vmem %s1102_s10, 256 }
 0x2ba   : > { %p1104_p12 = scmp.lt.s32.totalorder %s1514_s6, %s1102_s10  ;;  %p1105_p7 = scmp.lt.s32.totalorder %s1103_s24, %s1097_s26 }
 0x2bb   : > { %p1099_p6 = pnand %p1098_p2, %p1369_p11 }
 0x2bc   : > { %p1106_p0 = por %p1105_p7, %p1104_p12 }
 0x2bd   : > { %p1100_p10 = pneg %p1099_p6 }
 0x2bf   : > { %p1107_p4 = pnand %p1106_p0, %p1100_p10 }
 0x35b   : > { %v505_v49 = vpop.f32.mrb[0].mxu1 }
 0x35c   : > { %509 = vst [vmem:[%s323_s13] sm:$0xff] %v505_v49  ;;  %v824_v50 = vpop.f32.mrb[1].mxu1 }
 0x35d   : > { %1110 = shalt.err (!%p1107_p4)
}
 0x35e   : > { %s1111_s7 = scalar_lea.hbm %s1520_s25, 128  ;;  %s1115_s8 = scalar_lea.hbm %s1574_s5, 256 }
 0x35f   : > { %p1112_p1 = scmp.ne.s32.totalorder %s1520_s25, %s1111_s7  ;;  %p1116_p8 = scmp.lt.u32.totalorder %s1520_s25, %s1574_s5 }
 0x360   : > { %p1117_p9 = scmp.lt.u32.totalorder %s1115_s8, %s1111_s7  ;;  %p1119_p2 = scmp.lt.u32.totalorder %s1111_s7, %s1520_s25 }
 0x361   : > { %p1113_p3 = pnand %p1112_p1, %p1369_p11 }
 0x362   : > { %p1118_p13 = por %p1117_p9, %p1116_p8 }
 0x363   : > { %p1114_p5 = pneg %p1113_p3 }
 0x364   : > { %p1120_p6 = por %p1119_p2, %p1118_p13 }
 0x366   : > { %p1121_p10 = pnand %p1120_p6, %p1114_p5 }
 0x368   : > { %1124 = shalt.err (!%p1121_p10)
}
 0x369   : > { %863 = dma.vmem_to_hbm [thread:$0]  (%p1369_p11), %s1514_s6, 128, %s1520_s25, %s1469_s21  }
 0x36a PF: > { %s576_s13 = sand.u32 1, %s1167_s18   ;;  %p1588_p12 = scmp.ne.s32.totalorder %s1580_s27, 0 }
 0x36b   : > { %p1589_p7 = scmp.ge.s32.totalorder %s1187_s23, 2  ;;  %s577_s12 = scalar_lea.sflag [#allocation4], %s576_s13 }
 0x36d   : > { %p879_p0 = pnand %p1589_p7, %p1588_p12 }
 0x36f   : > { %1158 = dma.done.wait (!%p879_p0), %s577_s12, 128  }
 0x370   : > { %1160 = vsyncadd (!%p879_p0), %s577_s12, 4294967168  ;;  %s1590_s17 = sadd.s32 4294967294, %s1187_s23  }
 0x371   : > { %s585_s26 = sand.u32 1, %s1590_s17  }
 0x372   : > { %s586_s28 = scalar_lea.sflag [#allocation10], %s585_s26 }
 0x373   : > { %1162 = dma.done.wait (!%p879_p0), %s586_s28, 256  }
 0x374   : > { %1164 = vsyncadd (!%p879_p0), %s586_s28, 4294967040  ;;  %s26_s23 = sadd.s32 1, %s1187_s23   ;;  %s1591_s18 = smov %s1171_s19 }
 0x375   : > { %p23_p11 = scmp.ge.s32.totalorder %s26_s23, 4   ;;  %s1592_s19 = smov %s1175_s20 }
 0x376   : > { %s1593_s20 = smov %s1378_s15  ;;  %s1594_s21 = smov %s1183_s22 }
 0x377   : > { %s1595_s22 = smov %s1597_s9  ;;  %25 = sbr.rel (!%p23_p11) target bundleno = 9 (0x9), region = 119 }
 0x37e   :  { %600 = vsyncpa [#allocation3], 1 }
 0x37f   :  { %602 = vsyncpa [#allocation3 + $0x1], 1 }
 0x380   :  { %603 = vsyncpa [#allocation6], 1 }
 0x381   :  { %604 = vsyncpa [#allocation4], 1 }
 0x382   :  { %606 = vsyncpa [#allocation4 + $0x1], 1 }
 0x383   :  { %607 = vsyncpa [#allocation10], 1 }
 0x384   :  { %609 = vsyncpa [#allocation10 + $0x1], 1 }

// kernel: tpu_custom_call.1
= control target key start
LH: loop header
LB: loop body
LE: loop exit
PB: predicated region body
PF: predicated region fallthrough
CT: control target
= control target key end

     0   :  { %s1640_s0 = inlined_call_operand.hbm [shape: f32[2,8,32], index: 0, kind: input, shape index: {}]   ;;  %s1641_s1 = inlined_call_operand.hbm [shape: f32[2,32,128], index: 1, kind: input, shape index: {}]   ;;  %s1642_s2 = inlined_call_operand.hbm [shape: f32[2,128,128], index: 2, kind: input, shape index: {}]   ;;  %s1643_s3 = inlined_call_operand.hbm [shape: f32[2,8,128], index: 3, kind: output, shape index: {0}]   ;;  %s1644_s4 = inlined_call_operand.hbm [shape: f32[2,8,128], index: 4, kind: output, shape index: {1}]   ;;  %s1645_s5 = inlined_call_operand.hbm [shape: f32[8,256], index: 5, kind: output, shape index: {2}]  }
   0x1   :  { %1655 = sst [smem:[#allocation19_spill]] %s1640_s0 }
   0x2   :  { %1656 = sst [smem:[#allocation20_spill]] %s1641_s1 }
   0x3   :  { %11 = vsyncpa [#allocation3], 0 }
   0x4   :  { %13 = vsyncpa [#allocation3 + $0x1], 0 }
   0x5   :  { %14 = vsyncpa [#allocation6], 0 }
   0x6   :  { %16 = vsyncpa [#allocation6 + $0x1], 0 }
   0x7   :  { %17 = vsyncpa [#allocation4], 0 }
   0x8   :  { %19 = vsyncpa [#allocation4 + $0x1], 0 }
   0x9   :  { %20 = vsyncpa [#allocation10], 0 }
   0xa   :  { %22 = vsyncpa [#allocation10 + $0x1], 0  ;;  %s1283_s18 = smov 0   ;;  %s1285_s19 = smov 0  }
   0xb   :  { %s1287_s20 = smov 0   ;;  %s1289_s21 = smov 0  }
   0xc   :  { %s1291_s22 = smov 0   ;;  %s1293_s23 = smov 0  }
   0xd LB: > { %1657 = sst [smem:[#allocation16_spill]] %s1228_s20  ;;  %s1314_s24 = sadd.s32 4294967295, %s1240_s23   ;;  %s1240_s23 = sphi %s1293_s23, %s28_s23   ;;  %s1236_s22 = sphi %s1291_s22, %s1685_s22   ;;  %s1232_s21 = sphi %s1289_s21, %s1684_s21   ;;  %s1228_s20 = sphi %s1287_s20, %s1680_s20   ;;  %s1224_s19 = sphi %s1285_s19, %s1683_s19   ;;  %s1220_s18 = sphi %s1283_s18, %s1682_s18  }
   0xe   : > { %s1646_s25 = sadd.s32 4294967294, %s1240_s23   ;;  %s40_s26 = sadd.s32 1, %s1236_s22 }
   0xf   : > { %s49_s27 = sadd.s32 1, %s1228_s20  ;;  %p42_p0 = scmp.ge.s32.totalorder %s40_s26, 2 }
  0x10   : > { %p56_p1 = scmp.ne.s32.totalorder %s1228_s20, %s1224_s19  ;;  %p57_p2 = scmp.eq.s32.totalorder %s1240_s23, 0 }
  0x11   : > { %p62_p3 = scmp.ne.s32.totalorder %s1224_s19, %s1220_s18  ;;  %s1687_s26 = smov (%p42_p0, %s40_s26), 0 }
  0x12   : > { %1658 = sst [smem:[#allocation17_spill]] %s1687_s26  ;;  %p1326_p4 = por %p57_p2, %p56_p1 }
  0x13   : > { %p63_p5 = scmp.eq.s32.totalorder %s1314_s24, 0  ;;  %s44_s29 = ssub.s32 %s1236_s22, %s1687_s26 }
  0x14   : > { %p140_p6 = scmp.eq.s32.totalorder %s1314_s24, 1  ;;  %p47_p7 = scmp.eq.s32.totalorder %s44_s29, 0 }
  0x15   : > { %p1334_p8 = por %p63_p5, %p62_p3  ;;  %p146_p10 = scmp.eq.s32.totalorder %s1646_s25, 1 }
  0x16   : > { %p1338_p9 = por %p140_p6, %p56_p1  ;;  %p943_p13 = scmp.lt.s32.totalorder %s1240_s23, 2 }
  0x17   : > { %s1660_s30 = scalar_select %p1334_p8, 1, 0 }
  0x18   : > { %s1661_s6 = scalar_select %p1338_p9, 1, 0 }
  0x19   : > { %s1345_s7 = scalar_select %p47_p7, %s1228_s20, %s49_s27  }
  0x1a   : > { %p1347_p11 = por %p146_p10, %p62_p3  ;;  %s1354_s9 = sand.u32 1, %s1228_s20  }
  0x1b   : > { %1662 = sst [smem:[#allocation18_spill]] %s1345_s7  ;;  %s241_s10 = sand.u32 1, %s1240_s23  }
  0x1c   : > { %s1663_s8 = scalar_select %p1347_p11, 1, 0 }
  0x1d   : > { %s789_s11 = sshll.u32 %s1354_s9, 5  ;;  %p1360_p0 = pnand %p943_p13, %p1326_p4 }
  0x1e   : > { %s811_s13 = sshll.u32 %s1236_s22, 9  ;;  %s1665_s1 = sld [smem:[#allocation20_spill]] }
  0x1f   : > { %s1664_s12 = scalar_select %p1360_p0, 1, 0 }
  0x20   : > { %s245_s17 = scalar_lea.vmem [#allocation5], %s789_s11  ;;  %s1372_s28 = scalar_lea.sflag [#allocation6], %s241_s10 }
  0x21   : > { %s252_s27 = sshll.u32 %s245_s17, 4  ;;  %p1378_p2 = pneg %p1360_p0  ;;  %s1370_s27 = int_to_ptr.vmem [resolvable:$true] %s252_s27 }
  0x24   : > { %s1368_s16 = scalar_lea.hbm %s1665_s1, %s811_s13  ;;  %s1009_s11 = scalar_lea.hbm %s1665_s1, 1024 }
  0x25   : > { %s1004_s29 = scalar_lea.hbm %s1368_s16, 512  ;;  %p1010_p5 = scmp.lt.u32.totalorder %s1368_s16, %s1665_s1 }
  0x26   : > { %p1005_p1 = scmp.ne.s32.totalorder %s1368_s16, %s1004_s29  ;;  %p1011_p6 = scmp.lt.u32.totalorder %s1009_s11, %s1004_s29 }
  0x27   : > { %p1013_p10 = scmp.lt.u32.totalorder %s1004_s29, %s1368_s16 }
  0x28   : > { %p1007_p3 = pnand %p1378_p2, %p1005_p1  ;;  %p1012_p7 = por %p1011_p6, %p1010_p5 }
  0x2a   : > { %p1008_p4 = pneg %p1007_p3  ;;  %p1014_p13 = por %p1013_p10, %p1012_p7 }
  0x2c   : > { %p1015_p12 = pnand %p1014_p13, %p1008_p4 }
  0x2e   : > { %1018 = shalt.err (!%p1015_p12)
}
  0x2f   : > { %s1019_s10 = scalar_lea.vmem %s1370_s27, 512  ;;  %s1242_s13 = smov [#allocation5]  }
  0x30   : > { %p1020_p1 = scmp.ne.s32.totalorder %s1370_s27, %s1019_s10  ;;  %s1024_s14 = sshll.u32 %s1242_s13, 4  ;;  %s1025_s14 = int_to_ptr.vmem [resolvable:$false] %s1024_s14 }
  0x31   : > { %s1026_s15 = scalar_lea.vmem %s1025_s14, 1024  ;;  %p1027_p9 = scmp.lt.s32.totalorder %s1370_s27, %s1025_s14 }
  0x32   : > { %p1022_p3 = pnand %p1020_p1, %p1378_p2  ;;  %p1028_p8 = scmp.lt.s32.totalorder %s1026_s15, %s1019_s10 }
  0x34   : > { %p1023_p11 = pneg %p1022_p3  ;;  %p1029_p5 = por %p1028_p8, %p1027_p9 }
  0x36   : > { %p1030_p6 = pnand %p1029_p5, %p1023_p11 }
  0x38   : > { %1033 = shalt.err (!%p1030_p6)
}
  0x39   : > { %s1650_s29 = smov 128   ;;  %s1651_s11 = smov 8  }
  0x3a   : > { %929 = dma.hbm_to_vmem [thread:$0]  (!%p1360_p0), %s1368_s16, 512, %s1370_s27, %s1372_s28, %s1650_s29, %s1650_s29, %s1651_s11  }
  0x3b   : > { %p795_p8 = scmp.ge.s32.totalorder %s1240_s23, 1  ;;  %p281_p9 = scmp.lt.s32.totalorder %s1240_s23, 3 }
  0x3c   : > { %s787_s10 = sshll.u32 %s1354_s9, 3  ;;  %s788_s13 = sshll.u32 %s1236_s22, 7 }
  0x3d   : > { %p1407_p11 = pnand %p795_p8, %p281_p9  ;;  %s1668_s0 = sld [smem:[#allocation19_spill]] }
  0x3e   : > { %s226_s26 = scalar_lea.vmem [#allocation2], %s787_s10  ;;  %s223_s27 = scalar_lea.sflag [#allocation3], %s1354_s9 }
  0x3f   : > { %s1667_s17 = scalar_select %p1407_p11, 1, 0 }
  0x40   : > { %s234_s7 = sshll.u32 %s226_s26, 4  ;;  %s235_s7 = int_to_ptr.vmem [resolvable:$true] %s234_s7 }
  0x43   : > { %s1416_s1 = scalar_lea.hbm %s1668_s0, %s788_s13  ;;  %s1039_s14 = scalar_lea.hbm %s1668_s0, 256 }
  0x44   : > { %s1034_s29 = scalar_lea.hbm %s1416_s1, 128  ;;  %p1040_p10 = scmp.lt.u32.totalorder %s1416_s1, %s1668_s0 }
  0x45   : > { %p1035_p12 = scmp.ne.s32.totalorder %s1416_s1, %s1034_s29  ;;  %p1041_p13 = scmp.lt.u32.totalorder %s1039_s14, %s1034_s29 }
  0x46   : > { %p1043_p3 = scmp.lt.u32.totalorder %s1034_s29, %s1416_s1 }
  0x47   : > { %p1037_p4 = pnand %p1035_p12, %p1378_p2  ;;  %p1042_p1 = por %p1041_p13, %p1040_p10 }
  0x49   : > { %p1038_p7 = pneg %p1037_p4  ;;  %p1044_p5 = por %p1043_p3, %p1042_p1 }
  0x4b   : > { %p1045_p6 = pnand %p1044_p5, %p1038_p7 }
  0x4d   : > { %1048 = shalt.err (!%p1045_p6)
}
  0x4e   : > { %s1049_s26 = scalar_lea.vmem %s235_s7, 128  ;;  %s1245_s10 = smov [#allocation2]  }
  0x4f   : > { %p1050_p8 = scmp.ne.s32.totalorder %s235_s7, %s1049_s26  ;;  %s1054_s16 = sshll.u32 %s1245_s10, 4  ;;  %s1055_s16 = int_to_ptr.vmem [resolvable:$false] %s1054_s16 }
  0x50   : > { %s1056_s20 = scalar_lea.vmem %s1055_s16, 256  ;;  %p1057_p4 = scmp.lt.s32.totalorder %s235_s7, %s1055_s16 }
  0x51   : > { %p1052_p9 = pnand %p1050_p8, %p1378_p2  ;;  %p1058_p11 = scmp.lt.s32.totalorder %s1056_s20, %s1049_s26 }
  0x53   : > { %p1053_p12 = pneg %p1052_p9  ;;  %p1059_p0 = por %p1058_p11, %p1057_p4 }
  0x55   : > { %p1060_p10 = pnand %p1059_p0, %p1053_p12 }
  0x57   : > { %1063 = shalt.err (!%p1060_p10)
}
  0x58   : > { %p1669_p13 = scmp.ne.s32.totalorder %s1664_s12, 0  ;;  %s812_s29 = sshll.u32 %s1236_s22, 11 }
  0x59   : > { %s1670_s11 = sshll.u32 %s1354_s9, 7  ;;  %s1443_s0 = scalar_lea.hbm %s1642_s2, %s812_s29 }
  0x5a   : > { %926 = dma.hbm_to_vmem [thread:$0]  (!%p1669_p13), %s1416_s1, 128, %s235_s7, %s223_s27  }
  0x5b   : > { %s266_s14 = scalar_lea.vmem [#allocation7], %s1670_s11  ;;  %s1064_s16 = scalar_lea.hbm %s1443_s0, 2048 }
  0x5c   : > { %s273_s13 = sshll.u32 %s266_s14, 4  ;;  %p1065_p0 = scmp.ne.s32.totalorder %s1443_s0, %s1064_s16  ;;  %s1445_s13 = int_to_ptr.vmem [resolvable:$true] %s273_s13 }
  0x5d   : > { %s1069_s9 = scalar_lea.hbm %s1642_s2, 4096  ;;  %p1070_p1 = scmp.lt.u32.totalorder %s1443_s0, %s1642_s2 }
  0x5e   : > { %p1067_p11 = pnand %p1065_p0, %p1378_p2  ;;  %p1071_p3 = scmp.lt.u32.totalorder %s1069_s9, %s1064_s16 }
  0x5f   : > { %p1073_p6 = scmp.lt.u32.totalorder %s1064_s16, %s1443_s0 }
  0x60   : > { %p1068_p7 = pneg %p1067_p11  ;;  %p1072_p5 = por %p1071_p3, %p1070_p1 }
  0x62   : > { %p1074_p8 = por %p1073_p6, %p1072_p5 }
  0x64   : > { %p1075_p9 = pnand %p1074_p8, %p1068_p7 }
  0x66   : > { %1078 = shalt.err (!%p1075_p9)
}
  0x67   : > { %s1079_s20 = scalar_lea.vmem %s1445_s13, 2048  ;;  %s1246_s29 = smov [#allocation7]  }
  0x68   : > { %p1080_p12 = scmp.ne.s32.totalorder %s1445_s13, %s1079_s20  ;;  %s1084_s11 = sshll.u32 %s1246_s29, 4  ;;  %s1085_s11 = int_to_ptr.vmem [resolvable:$false] %s1084_s11 }
  0x69   : > { %s1086_s14 = scalar_lea.vmem %s1085_s11, 4096  ;;  %p1087_p0 = scmp.lt.s32.totalorder %s1445_s13, %s1085_s11 }
  0x6a   : > { %p1082_p4 = pnand %p1080_p12, %p1378_p2  ;;  %p1088_p11 = scmp.lt.s32.totalorder %s1086_s14, %s1079_s20 }
  0x6c   : > { %p1083_p10 = pneg %p1082_p4  ;;  %p1089_p1 = por %p1088_p11, %p1087_p0 }
  0x6e   : > { %p1090_p3 = pnand %p1089_p1, %p1083_p10 }
  0x70   : > { %1093 = shalt.err (!%p1090_p3)
}
  0x71   : > { %s1671_s15 = smov 8   ;;  %s1672_s10 = smov 128  }
  0x72   : > { %932 = dma.hbm_to_vmem [thread:$0]  (!%p1669_p13), %s1443_s0, 2048, %s1445_s13, %s1372_s28, %s1672_s10, %s1672_s10, %s1671_s15  }
  0x73   : > { %p1673_p2 = scmp.ne.s32.totalorder %s1667_s17, 0 }
  0x74   : > { %s1475_s25 = sand.u32 (!%p1673_p2), 1, %s1224_s19   ;;  %p1674_p7 = scmp.ne.s32.totalorder (!%p1673_p2), %s1660_s30, 0 }
  0x75   : > { %285 = sbr.rel (%p1673_p2) target bundleno = 889 (0x379), region = 32  ;;  %s1478_s16 = sshll.u32 (!%p1673_p2), %s1475_s25, 3 }
  0x76   : > { %s288_s12 = scalar_lea.sflag (!%p1673_p2), [#allocation3], %s1475_s25  ;;  %s291_s1 = scalar_lea.vmem (!%p1673_p2), [#allocation2], %s1478_s16 }
  0x7c   : > { %1203 = dma.done.wait (%p1674_p7), %s288_s12, 128  }
  0x7d   : > { %1205 = vsyncadd (%p1674_p7), %s288_s12, 4294967168  ;;  %s296_s0 = sand.u32 1, %s1314_s24   ;;  %s797_s28 = sshll.u32 %s1475_s25, 5 }
  0x7e   : > { %s297_s17 = scalar_lea.sflag [#allocation6], %s296_s0  ;;  %s300_s13 = scalar_lea.vmem [#allocation5], %s797_s28 }
  0x7f   : > { %1207 = dma.done.wait (%p1674_p7), %s297_s17, 2560  }
  0x80   : > { %1209 = vsyncadd (%p1674_p7), %s297_s17, 4294964736  ;;  %v1247_v0 = vmov 0.0|0.0   ;;  %vm1248_vm0 = vmmov 0   ;;  %v1249_v1 = vmov 0.0   ;;  %v358_v2 = vld [vmem:[%s300_s13] sm:$0xff]  ;;  %v359_v3 = vld [vmem:[%s300_s13 + $0x8] sm:$0xff]  ;;  %v452_v10 = vlaneseq }
  0x81   : > { %881 = vmatprep.subr.bf16.mxu0 %v1247_v0  ;;  %843 = vmatprep.mubr.msk.f32.mxu0 %vm1248_vm0, %v1249_v1  ;;  %v360_v4 = vld [vmem:[%s300_s13 + $0x10] sm:$0xff]  ;;  %v882_v5 = vpack.c.bf16 %v359_v3, %v358_v2  ;;  %v361_v6 = vld [vmem:[%s300_s13 + $0x18] sm:$0xff]  ;;  %vm378_vm1 = vcmask 261120   ;;  %s798_s30 = sshll.u32 %s1475_s25, 7  ;;  %s341_s9 = scalar_lea.vmem [#allocation8], %s1478_s16 }
  0x82   : > { %887 = vmatprep.subr.bf16.mxu1 %v1247_v0  ;;  %878 = vmatprep.mubr.msk.f32.mxu1 %vm1248_vm0, %v1249_v1  ;;  %v885_v7 = vpack.c.bf16 %v361_v6, %v360_v4  ;;  %v356_v8 = vld [vmem:[%s291_s1] sm:$0xff]  ;;  %v453_v11 = vand.u32 127, %v452_v10  ;;  %s1498_s7 = scalar_lea.vmem [#allocation7], %s798_s30  ;;  %s348_s27 = scalar_lea.vmem [#allocation9], %s1478_s16 }
  0x83   : > { %883 = vmatpush3.bf16.msra.mxu0 %v882_v5  ;;  %v357_v9 = vmul.f32 0.17677669, %v356_v8  ;;  %v362_v15 = vld [vmem:[%s1498_s7] sm:$0xff]  ;;  %v363_v16 = vld [vmem:[%s1498_s7 + $0x8] sm:$0xff]  ;;  %v364_v17 = vld [vmem:[%s1498_s7 + $0x10] sm:$0xff]  ;;  %s1528_s26 = sshll.u32 %s1232_s21, 7 }
  0x84   : > { %884 = vmatprep.subr.bf16.mxu0 %v1247_v0  ;;  %vm454_vm2 = vcmp.lt.s32.totalorder %v453_v11, 8  ;;  %v888_v18 = vpack.c.bf16 %v363_v16, %v362_v15  ;;  %v365_v19 = vld [vmem:[%s1498_s7 + $0x18] sm:$0xff]  ;;  %v366_v21 = vld [vmem:[%s1498_s7 + $0x20] sm:$0xff]  ;;  %v367_v22 = vld [vmem:[%s1498_s7 + $0x28] sm:$0xff]  ;;  %s581_s20 = sshll.u32 %s348_s27, 4  ;;  %s1534_s14 = scalar_lea.hbm %s1644_s4, %s1528_s26  ;;  %s582_s20 = int_to_ptr.vmem [resolvable:$true] %s581_s20 }
  0x85   : > { %v891_v20 = vpack.c.bf16 %v365_v19, %v364_v17  ;;  %v894_v23 = vpack.c.bf16 %v367_v22, %v366_v21  ;;  %v368_v24 = vld [vmem:[%s1498_s7 + $0x30] sm:$0xff]  ;;  %v369_v25 = vld [vmem:[%s1498_s7 + $0x38] sm:$0xff]  ;;  %v370_v27 = vld [vmem:[%s1498_s7 + $0x40] sm:$0xff]  ;;  %s1538_s15 = scalar_lea.sflag [#allocation10], %s296_s0  ;;  %s1094_s10 = scalar_lea.vmem %s582_s20, 128 }
  0x86   : > { %889 = vmatpush3.bf16.msra.mxu1 %v888_v18  ;;  %v897_v26 = vpack.c.bf16 %v369_v25, %v368_v24  ;;  %v371_v28 = vld [vmem:[%s1498_s7 + $0x48] sm:$0xff]  ;;  %v372_v34 = vld [vmem:[%s1498_s7 + $0x50] sm:$0xff]  ;;  %v373_v35 = vld [vmem:[%s1498_s7 + $0x58] sm:$0xff]  ;;  %p1095_p13 = scmp.ne.s32.totalorder %s582_s20, %s1094_s10  ;;  %p1675_p5 = scmp.ne.s32.totalorder %s1661_s6, 0 }
  0x87   : > { %886 = vmatpush3.bf16.msra.mxu0 %v885_v7  ;;  %890 = vmatprep.subr.bf16.mxu1 %v1247_v0  ;;  %v900_v29 = vpack.c.bf16 %v371_v28, %v370_v27  ;;  %v903_v36 = vpack.c.bf16 %v373_v35, %v372_v34  ;;  %v374_v37 = vld [vmem:[%s1498_s7 + $0x60] sm:$0xff]  ;;  %v375_v38 = vld [vmem:[%s1498_s7 + $0x68] sm:$0xff]  ;;  %v376_v40 = vld [vmem:[%s1498_s7 + $0x70] sm:$0xff]  ;;  %s1250_s12 = smov [#allocation9]  }
  0x88   : > { %v906_v39 = vpack.c.bf16 %v375_v38, %v374_v37  ;;  %v377_v41 = vld [vmem:[%s1498_s7 + $0x78] sm:$0xff]  ;;  %p1096_p6 = pnand %p1095_p13, %p1675_p5  ;;  %s1098_s1 = sshll.u32 %s1250_s12, 4  ;;  %s1099_s1 = int_to_ptr.vmem [resolvable:$false] %s1098_s1 }
  0x89   : > { %v909_v42 = vpack.c.bf16 %v377_v41, %v376_v40  ;;  %s1100_s21 = scalar_lea.vmem %s1099_s1, 256  ;;  %p1101_p9 = scmp.lt.s32.totalorder %s582_s20, %s1099_s1 }
  0x8a   : > { %844 = vmatmul.mubr.msk.f32.vlgmr.msra.gmra.mrb[0].mxu0 %vm378_vm1, %v357_v9  ;;  %892 = vmatpush3.bf16.msra.mxu1 %v891_v20  ;;  %p1097_p8 = pneg %p1096_p6  ;;  %p1102_p12 = scmp.lt.s32.totalorder %s1100_s21, %s1094_s10 }
  0x8b   : > { %893 = vmatprep.subr.bf16.mxu1 %v1247_v0 }
  0x8c   : > { %p1103_p4 = por %p1102_p12, %p1101_p9 }
  0x8e   : > { %895 = vmatpush3.bf16.msra.mxu1 %v894_v23  ;;  %p1104_p10 = pnand %p1103_p4, %p1097_p8 }
  0x8f   : > { %896 = vmatprep.subr.bf16.mxu1 %v1247_v0 }
  0x92   : > { %898 = vmatpush3.bf16.msra.mxu1 %v897_v26 }
  0x93   : > { %899 = vmatprep.subr.bf16.mxu1 %v1247_v0 }
  0x96   : > { %901 = vmatpush3.bf16.msra.mxu1 %v900_v29 }
  0x97   : > { %902 = vmatprep.subr.bf16.mxu1 %v1247_v0 }
  0x9a   : > { %904 = vmatpush3.bf16.msra.mxu1 %v903_v36 }
  0x9b   : > { %905 = vmatprep.subr.bf16.mxu1 %v1247_v0 }
  0x9e   : > { %907 = vmatpush3.bf16.msra.mxu1 %v906_v39 }
  0x9f   : > { %908 = vmatprep.subr.bf16.mxu1 %v1247_v0 }
  0xa2   : > { %910 = vmatpush3.bf16.msra.mxu1 %v909_v42 }
 0x15d   : > { %v448_v12 = vpop.f32.mrb[0].mxu0 }
 0x15e   : > { %v845_v13 = vpop.f32.mrb[1].mxu0  ;;  %v455_v14 = vsel %vm454_vm2, %v448_v12, -inf }
 0x15f   : > { %456 = vmax.xlane.f32.xlu0 %v455_v14 }
 0x1ec   : > { %v457_v30 = vpop.xlane.xlu0 %456 }
 0x1ed   : > { %v458_v31 = vsub.f32 %v455_v14, %v457_v30 }
 0x1ef   : > { %v459_v32 = vmul.f32 1.442695, %v458_v31 }
 0x1f1   : > { %998 = vpow2.f32 %v459_v32 }
 0x1fb   : > { %v999_v33 = vpop.eup %998 }
 0x1fc   : > { %461 = vadd.xlane.f32.xlu0 %v999_v33 }
 0x289   : > { %v462_v43 = vpop.xlane.xlu0 %461 }
 0x28a   : > { %1000 = vrcp.f32 %v462_v43 }
 0x28b   : > { %1002 = vlog2.f32 %v462_v43 }
 0x294   : > { %v1001_v44 = vpop.eup %1000 }
 0x295   : > { %v1003_v45 = vpop.eup %1002  ;;  %v465_v46 = vmul.f32 %v1001_v44, %v999_v33 }
 0x296   : > { %v467_v47 = vmul.f32 0.6931472, %v1003_v45 }
 0x297   : > { %879 = vmatmul.mubr.f32.vlgmr.msra.gmra.mrb[0].mxu1 %v465_v46  ;;  %469 = vst [vmem:[%s341_s9] sm:$0xff] %v465_v46 }
 0x298   : > { %v468_v48 = vsub.f32 %v458_v31, %v467_v47 }
 0x29a   : > { %470 = vst [vmem:[%s348_s27] sm:$0xff] %v468_v48 }
 0x29b   : > { %1107 = shalt.err (!%p1104_p10)
}
 0x29c   : > { %s1108_s24 = scalar_lea.hbm %s1534_s14, 128  ;;  %s1112_s17 = scalar_lea.hbm %s1644_s4, 256 }
 0x29d   : > { %p1109_p0 = scmp.ne.s32.totalorder %s1534_s14, %s1108_s24  ;;  %p1113_p3 = scmp.lt.u32.totalorder %s1534_s14, %s1644_s4 }
 0x29e   : > { %p1114_p2 = scmp.lt.u32.totalorder %s1112_s17, %s1108_s24  ;;  %p1116_p13 = scmp.lt.u32.totalorder %s1108_s24, %s1534_s14 }
 0x29f   : > { %p1110_p11 = pnand %p1109_p0, %p1675_p5 }
 0x2a0   : > { %p1115_p7 = por %p1114_p2, %p1113_p3 }
 0x2a1   : > { %p1111_p1 = pneg %p1110_p11 }
 0x2a2   : > { %p1117_p6 = por %p1116_p13, %p1115_p7 }
 0x2a4   : > { %p1118_p8 = pnand %p1117_p6, %p1111_p1 }
 0x2a6   : > { %1121 = shalt.err (!%p1118_p8)
}
 0x2a7   : > { %918 = dma.vmem_to_hbm [thread:$0]  (%p1675_p5), %s582_s20, 128, %s1534_s14, %s1538_s15  }
 0x2a8   : > { %s1562_s29 = scalar_lea.hbm %s1643_s3, %s1528_s26  ;;  %s567_s11 = sshll.u32 %s341_s9, 4  ;;  %s568_s11 = int_to_ptr.vmem [resolvable:$true] %s567_s11 }
 0x2a9   : > { %s543_s10 = scalar_lea.sflag [#allocation4], %s1475_s25  ;;  %s1122_s12 = scalar_lea.vmem %s568_s11, 128 }
 0x2aa   : > { %p1123_p9 = scmp.ne.s32.totalorder %s568_s11, %s1122_s12  ;;  %s1251_s1 = smov [#allocation8]  }
 0x2ab   : > { %s1126_s21 = sshll.u32 %s1251_s1, 4  ;;  %s1127_s21 = int_to_ptr.vmem [resolvable:$false] %s1126_s21 }
 0x2ac   : > { %p1124_p12 = pnand %p1123_p9, %p1675_p5  ;;  %s1128_s24 = scalar_lea.vmem %s1127_s21, 256 }
 0x2ad   : > { %p1129_p10 = scmp.lt.s32.totalorder %s568_s11, %s1127_s21  ;;  %p1130_p0 = scmp.lt.s32.totalorder %s1128_s24, %s1122_s12 }
 0x2ae   : > { %p1125_p4 = pneg %p1124_p12 }
 0x2af   : > { %p1131_p11 = por %p1130_p0, %p1129_p10 }
 0x2b1   : > { %p1132_p1 = pnand %p1131_p11, %p1125_p4 }
 0x2b3   : > { %1135 = shalt.err (!%p1132_p1)
}
 0x2b4   : > { %s1136_s25 = scalar_lea.hbm %s1562_s29, 128  ;;  %s1140_s14 = scalar_lea.hbm %s1643_s3, 256 }
 0x2b5   : > { %p1137_p3 = scmp.ne.s32.totalorder %s1562_s29, %s1136_s25  ;;  %p1141_p13 = scmp.lt.u32.totalorder %s1562_s29, %s1643_s3 }
 0x2b6   : > { %p1142_p6 = scmp.lt.u32.totalorder %s1140_s14, %s1136_s25  ;;  %p1144_p9 = scmp.lt.u32.totalorder %s1136_s25, %s1562_s29 }
 0x2b7   : > { %p1138_p2 = pnand %p1137_p3, %p1675_p5 }
 0x2b8   : > { %p1143_p8 = por %p1142_p6, %p1141_p13 }
 0x2b9   : > { %p1139_p7 = pneg %p1138_p2 }
 0x2ba   : > { %p1145_p12 = por %p1144_p9, %p1143_p8 }
 0x2bc   : > { %p1146_p4 = pnand %p1145_p12, %p1139_p7 }
 0x2be   : > { %1149 = shalt.err (!%p1146_p4)
}
 0x2bf   : > { %917 = dma.vmem_to_hbm [thread:$0]  (%p1675_p5), %s568_s11, 128, %s1562_s29, %s543_s10  }
 0x2c0   : > { %s355_s17 = scalar_lea.vmem [#allocation11], %s1478_s16  ;;  %s1591_s27 = scalar_lea.hbm %s1645_s5, %s1528_s26 }
 0x2c1   : > { %s596_s13 = sshll.u32 %s355_s17, 4  ;;  %s1252_s16 = smov [#allocation11]   ;;  %s1585_s13 = int_to_ptr.vmem [resolvable:$true] %s596_s13 }
 0x2c2   : > { %s1150_s12 = scalar_lea.vmem %s1585_s13, 128  ;;  %s1154_s29 = sshll.u32 %s1252_s16, 4  ;;  %s1155_s29 = int_to_ptr.vmem [resolvable:$false] %s1154_s29 }
 0x2c3   : > { %p1151_p10 = scmp.ne.s32.totalorder %s1585_s13, %s1150_s12  ;;  %s1156_s11 = scalar_lea.vmem %s1155_s29, 256 }
 0x2c4   : > { %p1157_p1 = scmp.lt.s32.totalorder %s1585_s13, %s1155_s29  ;;  %p1158_p3 = scmp.lt.s32.totalorder %s1156_s11, %s1150_s12 }
 0x2c5   : > { %p1152_p0 = pnand %p1151_p10, %p1675_p5 }
 0x2c6   : > { %p1159_p2 = por %p1158_p3, %p1157_p1 }
 0x2c7   : > { %p1153_p11 = pneg %p1152_p0 }
 0x2c9   : > { %p1160_p7 = pnand %p1159_p2, %p1153_p11 }
 0x36a   : > { %v537_v49 = vpop.f32.mrb[0].mxu1 }
 0x36b   : > { %541 = vst [vmem:[%s355_s17] sm:$0xff] %v537_v49  ;;  %v880_v50 = vpop.f32.mrb[1].mxu1 }
 0x36c   : > { %1163 = shalt.err (!%p1160_p7)
}
 0x36d   : > { %s1164_s26 = scalar_lea.hbm %s1591_s27, 128  ;;  %s1168_s21 = scalar_lea.hbm %s1645_s5, 256 }
 0x36e   : > { %p1165_p13 = scmp.ne.s32.totalorder %s1591_s27, %s1164_s26  ;;  %p1169_p9 = scmp.lt.u32.totalorder %s1591_s27, %s1645_s5 }
 0x36f   : > { %p1170_p12 = scmp.lt.u32.totalorder %s1168_s21, %s1164_s26  ;;  %p1172_p10 = scmp.lt.u32.totalorder %s1164_s26, %s1591_s27 }
 0x370   : > { %p1166_p6 = pnand %p1165_p13, %p1675_p5 }
 0x371   : > { %p1171_p4 = por %p1170_p12, %p1169_p9 }
 0x372   : > { %p1167_p8 = pneg %p1166_p6 }
 0x373   : > { %p1173_p0 = por %p1172_p10, %p1171_p4 }
 0x375   : > { %p1174_p11 = pnand %p1173_p0, %p1167_p8 }
 0x377   : > { %1177 = shalt.err (!%p1174_p11)
}
 0x378   : > { %919 = dma.vmem_to_hbm [thread:$0]  (%p1675_p5), %s1585_s13, 128, %s1591_s27, %s1538_s15  }
 0x379 PF: > { %s608_s9 = sand.u32 1, %s1220_s18   ;;  %p1676_p1 = scmp.ne.s32.totalorder %s1663_s8, 0 }
 0x37a   : > { %p1677_p3 = scmp.ge.s32.totalorder %s1240_s23, 2  ;;  %s609_s20 = scalar_lea.sflag [#allocation4], %s608_s9 }
 0x37c   : > { %p934_p2 = pnand %p1677_p3, %p1676_p1 }
 0x37e   : > { %1211 = dma.done.wait (!%p934_p2), %s609_s20, 128  }
 0x37f   : > { %1213 = vsyncadd (!%p934_p2), %s609_s20, 4294967168  ;;  %s1678_s14 = sadd.s32 4294967294, %s1240_s23  }
 0x380   : > { %s617_s0 = sand.u32 1, %s1678_s14  }
 0x381   : > { %s618_s28 = scalar_lea.sflag [#allocation10], %s617_s0 }
 0x382   : > { %1215 = dma.done.wait (!%p934_p2), %s618_s28, 256  }
 0x383   : > { %1217 = vsyncadd (!%p934_p2), %s618_s28, 4294967040  ;;  %s28_s23 = sadd.s32 1, %s1240_s23   ;;  %s1679_s6 = sld [smem:[#allocation16_spill]] }
 0x384   : > { %p25_p5 = scmp.ge.s32.totalorder %s28_s23, 4   ;;  %s1680_s20 = sld [smem:[#allocation18_spill]] }
 0x385   : > { %s1681_s15 = sld [smem:[#allocation17_spill]]  ;;  %s1682_s18 = smov %s1224_s19 }
 0x386   : > { %s1684_s21 = smov %s1236_s22  ;;  %27 = sbr.rel (!%p25_p5) target bundleno = 13 (0xd), region = 133 }
 0x389   : > { %s1683_s19 = smov %s1679_s6 }
 0x38b   : > { %s1685_s22 = smov %s1681_s15 }
 0x38d   :  { %632 = vsyncpa [#allocation3], 1 }
 0x38e   :  { %634 = vsyncpa [#allocation3 + $0x1], 1 }
 0x38f   :  { %635 = vsyncpa [#allocation6], 1 }
 0x390   :  { %637 = vsyncpa [#allocation6 + $0x1], 1 }
 0x391   :  { %638 = vsyncpa [#allocation4], 1 }
 0x392   :  { %640 = vsyncpa [#allocation4 + $0x1], 1 }
 0x393   :  { %641 = vsyncpa [#allocation10], 1 }
 0x394   :  { %643 = vsyncpa [#allocation10 + $0x1], 1 }

</bundles_post_ra>
